<compile_context>
chip_gen: v7x
topology: tpu7x:2x2x1
jax: 0.10.0
libtpu: 0.0.40
codegen_flags: <defaults>
</compile_context>

<pallas_src>
import functools

import jax
import jax.numpy as jnp
from jax import lax
from jax.experimental import pallas as pl
from jax.experimental.pallas import tpu as pltpu


def _round_up(x, m):
    return ((x + m - 1) // m) * m


def _identity(a):
    return a


_VMEM_TILE_BUDGET = 10 << 20   # stay well under v5e's 16 MiB default scoped VMEM
_MAX_BATCH_TILE = 8192


def _pick_batch_tile(B, requested, *, per_col_bytes, min_tiles):
    """Multiple-of-128 batch tile, clamped by the VMEM budget, never wider than the
    batch, and split so large batches yield >= min_tiles grid steps (v7x megacore)."""
    cap = max(128, (min(_MAX_BATCH_TILE, _VMEM_TILE_BUDGET // per_col_bytes) // 128) * 128)
    bt = max(128, (min(int(requested), cap) // 128) * 128)
    bt = min(bt, _round_up(B, 128))
    num_tiles = pl.cdiv(B, bt)
    if num_tiles < min_tiles and B > 128 * min_tiles:
        bt = max(128, _round_up(pl.cdiv(B, min_tiles), 128))
        num_tiles = pl.cdiv(B, bt)
    return bt, num_tiles


def _make_cost(B, S, H, A, x_item, o_item, w_item):
    return pl.CostEstimate(
        flops=2 * B * (H * S + H * H + A * H),
        transcendentals=0,
        bytes_accessed=(B * S * x_item + B * A * o_item
                        + (H * S + H * H + A * H) * w_item + (2 * H + A) * 4),
    )


# -----------------------------------------------------------------------------
# Kernel 1: transposed layout (batch on LANES).  xT is (S, bt), out is (A, bt).
# Fully lane-dense loads/stores; weights PyTorch-native (out, in); biases (out, 1).
# Inputs arrive already in the matmul dtype (pre-cast in the wrapper); accumulation,
# bias add and ReLU stay f32.
# -----------------------------------------------------------------------------
def _qnet_kernel_t(xT_ref, w1_ref, b1_ref, w2_ref, b2_ref, w3_ref, b3_ref, oT_ref,
                   *, acc_cast):
    xT = xT_ref[...]                                                        # (S, bt)
    h1 = jnp.dot(w1_ref[...], xT, preferred_element_type=jnp.float32) + b1_ref[...]
    h1 = jnp.maximum(h1, 0.0)                                               # (H, bt) f32
    h2 = jnp.dot(w2_ref[...], acc_cast(h1),
                 preferred_element_type=jnp.float32) + b2_ref[...]
    h2 = jnp.maximum(h2, 0.0)                                               # (H, bt) f32
    q = jnp.dot(w3_ref[...], acc_cast(h2),
                preferred_element_type=jnp.float32) + b3_ref[...]           # (A, bt) f32
    oT_ref[...] = q.astype(oT_ref.dtype)


# -----------------------------------------------------------------------------
# Kernel 2: PyTorch layout (batch on SUBLANES).  x is (bt, S), out is (bt, A).
# No transposes anywhere (wrapper or kernel): contraction over the trailing dims of
# both operands implements x @ W.T with PyTorch-native (out, in) weights.  Hidden
# activations (bt, H=128) are lane-dense; only the tiny x load / q store are
# lane-narrow, which is cheap at large bt.
# -----------------------------------------------------------------------------
_DN_LAST_LAST = (((1,), (1,)), ((), ()))


def _qnet_kernel_b(x_ref, w1_ref, b1_ref, w2_ref, b2_ref, w3_ref, b3_ref, o_ref,
                   *, acc_cast):
    x = x_ref[...]                                                          # (bt, S)
    h1 = lax.dot_general(x, w1_ref[...], _DN_LAST_LAST,
                         preferred_element_type=jnp.float32) + b1_ref[...]
    h1 = jnp.maximum(h1, 0.0)                                               # (bt, H) f32
    h2 = lax.dot_general(acc_cast(h1), w2_ref[...], _DN_LAST_LAST,
                         preferred_element_type=jnp.float32) + b2_ref[...]
    h2 = jnp.maximum(h2, 0.0)                                               # (bt, H) f32
    q = lax.dot_general(acc_cast(h2), w3_ref[...], _DN_LAST_LAST,
                        preferred_element_type=jnp.float32) + b3_ref[...]   # (bt, A) f32
    o_ref[...] = q.astype(o_ref.dtype)


def _prep_operands(params, matmul_dtype):
    if matmul_dtype is not None:
        w1, w2, w3 = (params[k].astype(matmul_dtype) for k in ("w1", "w2", "w3"))
        if jnp.dtype(matmul_dtype) == jnp.dtype(jnp.float32):
            acc_cast = _identity
        else:
            acc_cast = lambda a: a.astype(matmul_dtype)
    else:
        w1, w2, w3 = params["w1"], params["w2"], params["w3"]
        acc_cast = _identity
    return w1, w2, w3, acc_cast


def qnetwork_forward_t(xT, params, *, batch_tile=2048, matmul_dtype=None,
                       min_tiles=2, out_dtype=None):
    """Transposed-layout fast path: xT is (state_size, B); returns (action_size, B).
    Keep activations transposed end-to-end to avoid any wrapper pass over B-scaled data."""
    S, B = xT.shape
    H = params["w1"].shape[0]
    A = params["w3"].shape[0]
    assert params["w1"].shape == (H, S)
    assert params["w2"].shape == (H, H)
    assert params["w3"].shape == (A, H)

    out_dtype = xT.dtype if out_dtype is None else out_dtype
    w1, w2, w3, acc_cast = _prep_operands(params, matmul_dtype)
    if matmul_dtype is not None:
        xT = xT.astype(matmul_dtype)       # wrapper-side pre-cast (no-op if already bf16)
    b1, b2, b3 = params["b1"], params["b2"], params["b3"]

    x_item = jnp.dtype(xT.dtype).itemsize
    o_item = jnp.dtype(out_dtype).itemsize
    per_col = (2 * _round_up(S, 8) * x_item      # double-buffered x.T tile
               + 2 * _round_up(A, 8) * o_item    # double-buffered out tile
               + 2 * H * 4)                      # live h1/h2 f32 activations
    bt, num_tiles = _pick_batch_tile(B, batch_tile, per_col_bytes=per_col,
                                     min_tiles=min_tiles)

    kernel = functools.partial(_qnet_kernel_t, acc_cast=acc_cast)
    full = lambda shape: pl.BlockSpec(shape, lambda i: (0, 0))   # VMEM-resident, copied once

    return pl.pallas_call(
        kernel,
        out_shape=jax.ShapeDtypeStruct((A, B), out_dtype),
        grid_spec=pltpu.PrefetchScalarGridSpec(
            num_scalar_prefetch=0,
            grid=(num_tiles,),
            in_specs=[
                pl.BlockSpec((S, bt), lambda i: (0, i)),   # x.T tile (lane-dense)
                full((H, S)), full((H, 1)),                # fc1: W (out,in), b (out,1)
                full((H, H)), full((H, 1)),                # fc2
                full((A, H)), full((A, 1)),                # fc3
            ],
            out_specs=pl.BlockSpec((A, bt), lambda i: (0, i)),
        ),
        compiler_params=pltpu.CompilerParams(dimension_semantics=("parallel",)),
        cost_estimate=_make_cost(B, S, H, A, x_item, o_item, jnp.dtype(w1.dtype).itemsize),
    )(xT, w1, b1, w2, b2, w3, b3)


def qnetwork_forward(x, params, *, batch_tile=2048, matmul_dtype=None,
                     min_tiles=2, out_dtype=None):
    """PyTorch-layout forward: x is (B, state_size); returns (B, action_size).
    Uses the batch-on-sublanes kernel so there is NO wrapper-side transpose pass."""
    B, S = x.shape
    H = params["w1"].shape[0]
    A = params["w3"].shape[0]

    out_dtype = x.dtype if out_dtype is None else out_dtype
    w1, w2, w3, acc_cast = _prep_operands(params, matmul_dtype)
    if matmul_dtype is not None:
        x = x.astype(matmul_dtype)
    # Row-vector biases (O(H) reshape, negligible) broadcast along the sublane/batch axis.
    b1 = params["b1"].reshape(1, H)
    b2 = params["b2"].reshape(1, H)
    b3 = params["b3"].reshape(1, A)

    x_item = jnp.dtype(x.dtype).itemsize
    o_item = jnp.dtype(out_dtype).itemsize
    per_row = (2 * _round_up(S, 128) * x_item     # double-buffered x tile (lane-padded)
               + 2 * _round_up(A, 128) * o_item   # double-buffered out tile (lane-padded)
               + 2 * _round_up(H, 128) * 4)       # live h1/h2 f32 activations
    bt, num_tiles = _pick_batch_tile(B, batch_tile, per_col_bytes=per_row,
                                     min_tiles=min_tiles)

    kernel = functools.partial(_qnet_kernel_b, acc_cast=acc_cast)
    full = lambda shape: pl.BlockSpec(shape, lambda i: (0, 0))

    return pl.pallas_call(
        kernel,
        out_shape=jax.ShapeDtypeStruct((B, A), out_dtype),
        grid_spec=pltpu.PrefetchScalarGridSpec(
            num_scalar_prefetch=0,
            grid=(num_tiles,),
            in_specs=[
                pl.BlockSpec((bt, S), lambda i: (i, 0)),   # x tile (PyTorch layout)
                full((H, S)), full((1, H)),                # fc1: W (out,in), b (1,out)
                full((H, H)), full((1, H)),                # fc2
                full((A, H)), full((1, A)),                # fc3
            ],
            out_specs=pl.BlockSpec((bt, A), lambda i: (i, 0)),
        ),
        compiler_params=pltpu.CompilerParams(dimension_semantics=("parallel",)),
        cost_estimate=_make_cost(B, S, H, A, x_item, o_item, jnp.dtype(w1.dtype).itemsize),
    )(x, w1, b1, w2, b2, w3, b3)


def init_params(key, state_size, action_size, hidden_size):
    """PyTorch-native layout: W is (out, in), b is (out, 1); uniform fan-in init."""
    ks = jax.random.split(key, 6)

    def linear(kw, kb, fan_in, fan_out):
        bound = 1.0 / jnp.sqrt(jnp.float32(fan_in))
        w = jax.random.uniform(kw, (fan_out, fan_in), jnp.float32, -bound, bound)
        b = jax.random.uniform(kb, (fan_out, 1), jnp.float32, -bound, bound)
        return w, b

    w1, b1 = linear(ks[0], ks[1], state_size, hidden_size)
    w2, b2 = linear(ks[2], ks[3], hidden_size, hidden_size)
    w3, b3 = linear(ks[4], ks[5], hidden_size, action_size)
    return {"w1": w1, "b1": b1, "w2": w2, "b2": b2, "w3": w3, "b3": b3}


def reference_forward(x, params, matmul_dtype=None):
    """Plain-JAX reference matching nn.Linear semantics (y = x @ W.T + b)."""
    cast = (lambda a: a.astype(matmul_dtype)) if matmul_dtype is not None else (lambda a: a)

    def lin(h, w, b):
        return jnp.dot(cast(h), cast(w).T, preferred_element_type=jnp.float32) + b.reshape(1, -1)

    h1 = jnp.maximum(lin(x, params["w1"], params["b1"]), 0.0)
    h2 = jnp.maximum(lin(h1, params["w2"], params["b2"]), 0.0)
    return lin(h2, params["w3"], params["b3"])


if __name__ == "__main__":
    # Small shapes consistent with QNetwork(state_size, action_size, hidden_size=128).
    batch, state_size, action_size, hidden_size = 200, 16, 8, 128

    key = jax.random.PRNGKey(0)
    k_params, k_x = jax.random.split(key)
    params = init_params(k_params, state_size, action_size, hidden_size)
    x = jax.random.normal(k_x, (batch, state_size), jnp.float32)
    ref = reference_forward(x, params)

    # 1) PyTorch-layout path, default tiling (single block; ragged batch edge is masked).
    out = jax.block_until_ready(qnetwork_forward(x, params))
    assert out.shape == (batch, action_size)
    assert jnp.allclose(out, ref, atol=2e-3, rtol=2e-3), "f32 PyTorch-layout kernel mismatch"

    # 2) Transposed fast path, forced 2-tile grid with a ragged last tile (200 = 128 + 72).
    outT = jax.block_until_ready(qnetwork_forward_t(x.T, params, batch_tile=128))
    assert outT.shape == (action_size, batch)
    assert jnp.allclose(outT.T, ref, atol=2e-3, rtol=2e-3), "f32 transposed kernel mismatch"

    # 3) bf16 MXU path (x / weights pre-cast in the wrapper; f32 accumulate, bias, ReLU).
    ref_bf16 = reference_forward(x, params, matmul_dtype=jnp.bfloat16)
    out_bf16 = jax.block_until_ready(qnetwork_forward(x, params, matmul_dtype=jnp.bfloat16))
    assert jnp.allclose(out_bf16, ref_bf16, atol=5e-2, rtol=5e-2), "bf16 kernel mismatch"

    print("KERNEL_OK")
</pallas_src>

<mosaic_0001>
module attributes {stable_mosaic.version = 11 : i64} {
  func.func @_qnet_kernel_b(%arg0: i32, %arg1: memref<256x16xf32, #tpu.memory_space<vmem>>, %arg2: memref<128x16xf32, #tpu.memory_space<vmem>>, %arg3: memref<1x128xf32, #tpu.memory_space<vmem>>, %arg4: memref<128x128xf32, #tpu.memory_space<vmem>>, %arg5: memref<1x128xf32, #tpu.memory_space<vmem>>, %arg6: memref<8x128xf32, #tpu.memory_space<vmem>>, %arg7: memref<1x8xf32, #tpu.memory_space<vmem>>, %arg8: memref<256x8xf32, #tpu.memory_space<vmem>>) attributes {dimension_semantics = [#tpu.dimension_semantics<parallel>], iteration_bounds = array<i64: 1>, scalar_prefetch = 0 : i64, scratch_operands = 0 : i64, tpu.core_type = #tpu.core_type<tc>, window_params = [{transform_indices = @transform_0, window_bounds = array<i64: 256, 16>}, {pipeline_mode = #tpu.pipeline_mode<synchronous>, transform_indices = @transform_1, window_bounds = array<i64: 128, 16>}, {pipeline_mode = #tpu.pipeline_mode<synchronous>, transform_indices = @transform_2, window_bounds = array<i64: 1, 128>}, {pipeline_mode = #tpu.pipeline_mode<synchronous>, transform_indices = @transform_3, window_bounds = array<i64: 128, 128>}, {pipeline_mode = #tpu.pipeline_mode<synchronous>, transform_indices = @transform_4, window_bounds = array<i64: 1, 128>}, {pipeline_mode = #tpu.pipeline_mode<synchronous>, transform_indices = @transform_5, window_bounds = array<i64: 8, 128>}, {pipeline_mode = #tpu.pipeline_mode<synchronous>, transform_indices = @transform_6, window_bounds = array<i64: 1, 8>}, {transform_indices = @transform_7, window_bounds = array<i64: 256, 8>}]} {
    %c0 = arith.constant 0 : index
    %c0_0 = arith.constant 0 : index
    %0 = vector.load %arg1[%c0, %c0_0] : memref<256x16xf32, #tpu.memory_space<vmem>>, vector<256x16xf32>
    %c0_1 = arith.constant 0 : index
    %c0_2 = arith.constant 0 : index
    %1 = vector.load %arg2[%c0_1, %c0_2] : memref<128x16xf32, #tpu.memory_space<vmem>>, vector<128x16xf32>
    %cst = arith.constant dense<0.000000e+00> : vector<256x128xf32>
    %2 = tpu.matmul %0, %1, %cst {dimension_numbers = #tpu.dot_dimension_numbers<[1], [1], [0], [0], [0, 0, 1, 0], [], []>} : vector<256x16xf32>, vector<128x16xf32>, vector<256x128xf32> -> vector<256x128xf32>
    %c0_3 = arith.constant 0 : index
    %c0_4 = arith.constant 0 : index
    %3 = vector.load %arg3[%c0_3, %c0_4] : memref<1x128xf32, #tpu.memory_space<vmem>>, vector<1x128xf32>
    %4 = vector.broadcast %3 : vector<1x128xf32> to vector<256x128xf32>
    %5 = arith.addf %2, %4 : vector<256x128xf32>
    %cst_5 = arith.constant 0.000000e+00 : f32
    %6 = vector.broadcast %cst_5 : f32 to vector<256x128xf32>
    %7 = arith.maximumf %5, %6 : vector<256x128xf32>
    %c0_6 = arith.constant 0 : index
    %c0_7 = arith.constant 0 : index
    %8 = vector.load %arg4[%c0_6, %c0_7] : memref<128x128xf32, #tpu.memory_space<vmem>>, vector<128x128xf32>
    %cst_8 = arith.constant dense<0.000000e+00> : vector<256x128xf32>
    %9 = tpu.matmul %7, %8, %cst_8 {dimension_numbers = #tpu.dot_dimension_numbers<[1], [1], [0], [0], [0, 0, 1, 0], [], []>} : vector<256x128xf32>, vector<128x128xf32>, vector<256x128xf32> -> vector<256x128xf32>
    %c0_9 = arith.constant 0 : index
    %c0_10 = arith.constant 0 : index
    %10 = vector.load %arg5[%c0_9, %c0_10] : memref<1x128xf32, #tpu.memory_space<vmem>>, vector<1x128xf32>
    %11 = vector.broadcast %10 : vector<1x128xf32> to vector<256x128xf32>
    %12 = arith.addf %9, %11 : vector<256x128xf32>
    %cst_11 = arith.constant 0.000000e+00 : f32
    %13 = vector.broadcast %cst_11 : f32 to vector<256x128xf32>
    %14 = arith.maximumf %12, %13 : vector<256x128xf32>
    %c0_12 = arith.constant 0 : index
    %c0_13 = arith.constant 0 : index
    %15 = vector.load %arg6[%c0_12, %c0_13] : memref<8x128xf32, #tpu.memory_space<vmem>>, vector<8x128xf32>
    %cst_14 = arith.constant dense<0.000000e+00> : vector<256x8xf32>
    %16 = tpu.matmul %14, %15, %cst_14 {dimension_numbers = #tpu.dot_dimension_numbers<[1], [1], [0], [0], [0, 0, 1, 0], [], []>} : vector<256x128xf32>, vector<8x128xf32>, vector<256x8xf32> -> vector<256x8xf32>
    %c0_15 = arith.constant 0 : index
    %c0_16 = arith.constant 0 : index
    %17 = vector.load %arg7[%c0_15, %c0_16] : memref<1x8xf32, #tpu.memory_space<vmem>>, vector<1x8xf32>
    %18 = vector.broadcast %17 : vector<1x8xf32> to vector<256x8xf32>
    %19 = arith.addf %16, %18 : vector<256x8xf32>
    %c0_17 = arith.constant 0 : index
    %c0_18 = arith.constant 0 : index
    %20 = vector.load %arg8[%c0_17, %c0_18] : memref<256x8xf32, #tpu.memory_space<vmem>>, vector<256x8xf32>
    tpu.vector_store %arg8[%c0_17, %c0_18], %19 {strides = array<i32>} : memref<256x8xf32, #tpu.memory_space<vmem>>, vector<256x8xf32>,
    return
  }
  func.func @transform_0(%arg0: i32) -> (i32, i32) {
    %c0_i32 = arith.constant 0 : i32
    %c0_i32_0 = arith.constant 0 : i32
    return %arg0, %c0_i32 : i32, i32
  }
  func.func @transform_1(%arg0: i32) -> (i32, i32) {
    %c0_i32 = arith.constant 0 : i32
    %c0_i32_0 = arith.constant 0 : i32
    %c0_i32_1 = arith.constant 0 : i32
    return %c0_i32, %c0_i32_0 : i32, i32
  }
  func.func @transform_2(%arg0: i32) -> (i32, i32) {
    %c0_i32 = arith.constant 0 : i32
    %c0_i32_0 = arith.constant 0 : i32
    %c0_i32_1 = arith.constant 0 : i32
    return %c0_i32, %c0_i32_0 : i32, i32
  }
  func.func @transform_3(%arg0: i32) -> (i32, i32) {
    %c0_i32 = arith.constant 0 : i32
    %c0_i32_0 = arith.constant 0 : i32
    %c0_i32_1 = arith.constant 0 : i32
    return %c0_i32, %c0_i32_0 : i32, i32
  }
  func.func @transform_4(%arg0: i32) -> (i32, i32) {
    %c0_i32 = arith.constant 0 : i32
    %c0_i32_0 = arith.constant 0 : i32
    %c0_i32_1 = arith.constant 0 : i32
    return %c0_i32, %c0_i32_0 : i32, i32
  }
  func.func @transform_5(%arg0: i32) -> (i32, i32) {
    %c0_i32 = arith.constant 0 : i32
    %c0_i32_0 = arith.constant 0 : i32
    %c0_i32_1 = arith.constant 0 : i32
    return %c0_i32, %c0_i32_0 : i32, i32
  }
  func.func @transform_6(%arg0: i32) -> (i32, i32) {
    %c0_i32 = arith.constant 0 : i32
    %c0_i32_0 = arith.constant 0 : i32
    %c0_i32_1 = arith.constant 0 : i32
    return %c0_i32, %c0_i32_0 : i32, i32
  }
  func.func @transform_7(%arg0: i32) -> (i32, i32) {
    %c0_i32 = arith.constant 0 : i32
    %c0_i32_0 = arith.constant 0 : i32
    return %arg0, %c0_i32 : i32, i32
  }
}

</mosaic_0001>

<bundles_post_ra>
// kernel: tpu_custom_call.1
= control target key start
LH: loop header
LB: loop body
LE: loop exit
PB: predicated region body
PF: predicated region fallthrough
CT: control target
= control target key end

     0   :  { %vm81_vm0 = vcmask 130048   ;;  %vm996_vm2 = vcmask 64512   ;;  %s2146_s0 = inlined_call_operand.vmem [shape: f32[200,16], index: 0, kind: input, shape index: {}]   ;;  %s2147_s1 = inlined_call_operand.vmem [shape: f32[128,16], index: 1, kind: input, shape index: {}]   ;;  %s2148_s2 = inlined_call_operand.vmem [shape: f32[1,128], index: 2, kind: input, shape index: {}]   ;;  %s2149_s3 = inlined_call_operand.vmem [shape: f32[128,128], index: 3, kind: input, shape index: {}]   ;;  %s2150_s4 = inlined_call_operand.vmem [shape: f32[1,128], index: 4, kind: input, shape index: {}]   ;;  %s2151_s5 = inlined_call_operand.vmem [shape: f32[8,128], index: 5, kind: input, shape index: {}]   ;;  %s2152_s6 = inlined_call_operand.vmem [shape: f32[1,8], index: 6, kind: input, shape index: {}]   ;;  %s2153_s7 = inlined_call_operand.vmem [shape: f32[200,8], index: 7, kind: output, shape index: {}]  }
   0x1   :  { %v58_v0 = vld [vmem:[%s2147_s1] sm:$0xff]  ;;  %v59_v1 = vld [vmem:[%s2147_s1 + $0x8] sm:$0xff]  ;;  %v60_v2 = vld [vmem:[%s2147_s1 + $0x10] sm:$0xff] }
   0x2   :  { %v1555_v3 = vpack.c.bf16 %v59_v1, %v58_v0  ;;  %vm1688_vm1 = vmpackc.low %vm81_vm0, %vm81_vm0  ;;  %v61_v5 = vld [vmem:[%s2147_s1 + $0x18] sm:$0xff]  ;;  %v26_v7 = vld [vmem:[%s2146_s0] sm:$0xff] }
   0x3   :  { %v1561_v6 = vpack.c.bf16 %v61_v5, %v60_v2  ;;  %v62_v8 = vld [vmem:[%s2147_s1 + $0x20] sm:$0xff]  ;;  %v63_v9 = vld [vmem:[%s2147_s1 + $0x28] sm:$0xff]  ;;  %1377 = vmatprep.mubr.msk.f32.mxu0 %vm81_vm0, %v26_v7  ;;  %v64_v11 = vld [vmem:[%s2147_s1 + $0x30] sm:$0xff] }
   0x4   :  { %1557 = vmatprep.subr.msk.bf16.mxu0 %vm1688_vm1, %v1555_v3  ;;  %v1567_v10 = vpack.c.bf16 %v63_v9, %v62_v8  ;;  %v65_v12 = vld [vmem:[%s2147_s1 + $0x38] sm:$0xff]  ;;  %v483_v13 = vld [vmem:[%s2149_s3] sm:$0xff]  ;;  %v484_v14 = vld [vmem:[%s2149_s3 + $0x8] sm:$0xff] }
   0x5   :  { %1560 = vmatpush3.bf16.xpose.msk.msra.mxu0 %vm1688_vm1, %v1555_v3  ;;  %v1573_v15 = vpack.c.bf16 %v65_v12, %v64_v11  ;;  %v1603_v16 = vpack.c.bf16 %v484_v14, %v483_v13  ;;  %v485_v17 = vld [vmem:[%s2149_s3 + $0x10] sm:$0xff]  ;;  %v486_v18 = vld [vmem:[%s2149_s3 + $0x18] sm:$0xff]  ;;  %v66_v20 = vld [vmem:[%s2147_s1 + $0x40] sm:$0xff] }
   0x6   :  { %1563 = vmatprep.subr.msk.bf16.mxu0 %vm1688_vm1, %v1561_v6  ;;  %v1607_v19 = vpack.c.bf16 %v486_v18, %v485_v17  ;;  %v67_v21 = vld [vmem:[%s2147_s1 + $0x48] sm:$0xff]  ;;  %v487_v22 = vld [vmem:[%s2149_s3 + $0x20] sm:$0xff]  ;;  %v68_v26 = vld [vmem:[%s2147_s1 + $0x50] sm:$0xff] }
   0x7   :  { %1604 = vmatprep.subr.bf16.mxu1 %v1603_v16  ;;  %v488_v23 = vld [vmem:[%s2149_s3 + $0x28] sm:$0xff]  ;;  %v1579_v24 = vpack.c.bf16 %v67_v21, %v66_v20  ;;  %v69_v27 = vld [vmem:[%s2147_s1 + $0x58] sm:$0xff]  ;;  %v489_v28 = vld [vmem:[%s2149_s3 + $0x30] sm:$0xff] }
   0x8   :  { %1606 = vmatpush3.bf16.xpose.msra.mxu1 %v1603_v16  ;;  %v1611_v25 = vpack.c.bf16 %v488_v23, %v487_v22  ;;  %v490_v29 = vld [vmem:[%s2149_s3 + $0x38] sm:$0xff]  ;;  %v1585_v30 = vpack.c.bf16 %v69_v27, %v68_v26  ;;  %v70_v32 = vld [vmem:[%s2147_s1 + $0x60] sm:$0xff]  ;;  %v71_v33 = vld [vmem:[%s2147_s1 + $0x68] sm:$0xff] }
   0x9   :  { %1608 = vmatprep.subr.bf16.mxu1 %v1607_v19  ;;  %v1615_v31 = vpack.c.bf16 %v490_v29, %v489_v28  ;;  %v491_v34 = vld [vmem:[%s2149_s3 + $0x40] sm:$0xff]  ;;  %v492_v35 = vld [vmem:[%s2149_s3 + $0x48] sm:$0xff]  ;;  %v1591_v36 = vpack.c.bf16 %v71_v33, %v70_v32  ;;  %v72_v38 = vld [vmem:[%s2147_s1 + $0x70] sm:$0xff] }
   0xa   :  { %v1619_v37 = vpack.c.bf16 %v492_v35, %v491_v34  ;;  %v73_v39 = vld [vmem:[%s2147_s1 + $0x78] sm:$0xff]  ;;  %v493_v40 = vld [vmem:[%s2149_s3 + $0x50] sm:$0xff]  ;;  %v495_v44 = vld [vmem:[%s2149_s3 + $0x60] sm:$0xff] }
   0xb   :  { %v494_v41 = vld [vmem:[%s2149_s3 + $0x58] sm:$0xff]  ;;  %v1597_v42 = vpack.c.bf16 %v73_v39, %v72_v38  ;;  %v496_v45 = vld [vmem:[%s2149_s3 + $0x68] sm:$0xff]  ;;  %v497_v47 = vld [vmem:[%s2149_s3 + $0x70] sm:$0xff] }
   0xc   :  { %v1623_v43 = vpack.c.bf16 %v494_v41, %v493_v40  ;;  %v1627_v46 = vpack.c.bf16 %v496_v45, %v495_v44  ;;  %v498_v48 = vld [vmem:[%s2149_s3 + $0x78] sm:$0xff]  ;;  %v27_v49 = vld [vmem:[%s2146_s0 + $0x8] sm:$0xff]  ;;  %v28_v50 = vld [vmem:[%s2146_s0 + $0x10] sm:$0xff] }
   0xd   :  { %1566 = vmatpush3.bf16.xpose.msk.msra.mxu0 %vm1688_vm1, %v1561_v6  ;;  %v1631_v51 = vpack.c.bf16 %v498_v48, %v497_v47  ;;  %v29_v52 = vld [vmem:[%s2146_s0 + $0x18] sm:$0xff]  ;;  %v30_v53 = vld [vmem:[%s2146_s0 + $0x20] sm:$0xff]  ;;  %v31_v54 = vld [vmem:[%s2146_s0 + $0x28] sm:$0xff] }
   0xe   :  { %1569 = vmatprep.subr.msk.bf16.mxu0 %vm1688_vm1, %v1567_v10  ;;  %v32_v55 = vld [vmem:[%s2146_s0 + $0x30] sm:$0xff]  ;;  %v33_v56 = vld [vmem:[%s2146_s0 + $0x38] sm:$0xff]  ;;  %v34_v57 = vld [vmem:[%s2146_s0 + $0x40] sm:$0xff] }
   0xf   :  { %v35_v58 = vld [vmem:[%s2146_s0 + $0x48] sm:$0xff]  ;;  %v36_v59 = vld [vmem:[%s2146_s0 + $0x50] sm:$0xff]  ;;  %v37_v60 = vld [vmem:[%s2146_s0 + $0x58] sm:$0xff] }
  0x10   :  { %1610 = vmatpush3.bf16.xpose.msra.mxu1 %v1607_v19  ;;  %v38_v61 = vld [vmem:[%s2146_s0 + $0x60] sm:$0xff]  ;;  %v39_v62 = vld [vmem:[%s2146_s0 + $0x68] sm:$0xff]  ;;  %v40_v63 = vld [vmem:[%s2146_s0 + $0x70] sm:$0xff] }
  0x11   :  { %1612 = vmatprep.subr.bf16.mxu1 %v1611_v25  ;;  %v41_v0 = vld [vmem:[%s2146_s0 + $0x78] sm:$0xff]  ;;  %v42_v1 = vld [vmem:[%s2146_s0 + $0x80] sm:$0xff]  ;;  %v43_v2 = vld [vmem:[%s2146_s0 + $0x88] sm:$0xff] }
  0x12   :  { %v44_v3 = vld [vmem:[%s2146_s0 + $0x90] sm:$0xff]  ;;  %v45_v4 = vld [vmem:[%s2146_s0 + $0x98] sm:$0xff]  ;;  %v46_v5 = vld [vmem:[%s2146_s0 + $0xa0] sm:$0xff] }
  0x13   :  { %v47_v6 = vld [vmem:[%s2146_s0 + $0xa8] sm:$0xff]  ;;  %v48_v7 = vld [vmem:[%s2146_s0 + $0xb0] sm:$0xff]  ;;  %v49_v8 = vld [vmem:[%s2146_s0 + $0xb8] sm:$0xff] }
  0x14   :  { %v50_v9 = vld [vmem:[%s2146_s0 + $0xc0] sm:$0xff]  ;;  %v52_v11 = vld [vmem:[%s2146_s0 + $0xd0] sm:$0xff]  ;;  %v53_v12 = vld [vmem:[%s2146_s0 + $0xd8] sm:$0xff] }
  0x15   :  { %1572 = vmatpush3.bf16.xpose.msk.msra.mxu0 %vm1688_vm1, %v1567_v10  ;;  %v51_v10 = vld [vmem:[%s2146_s0 + $0xc8] sm:$0xff]  ;;  %v54_v13 = vld [vmem:[%s2146_s0 + $0xe0] sm:$0xff]  ;;  %v57_v16 = vld [vmem:[%s2146_s0 + $0xf8] sm:$0xff] }
  0x16   :  { %1575 = vmatprep.subr.msk.bf16.mxu0 %vm1688_vm1, %v1573_v15  ;;  %v55_v14 = vld [vmem:[%s2146_s0 + $0xe8] sm:$0xff]  ;;  %v763_v17 = vld [vmem:[%s2151_s5] sm:$0xff] }
  0x17   :  { %v1945_v18 = vld [vmem:[%s2148_s2] ss:$0 sm:$0xff] }
  0x18   :  { %1614 = vmatpush3.bf16.xpose.msra.mxu1 %v1611_v25 }
  0x19   :  { %1616 = vmatprep.subr.bf16.mxu1 %v1615_v31 }
  0x1d   :  { %1578 = vmatpush3.bf16.xpose.msk.msra.mxu0 %vm1688_vm1, %v1573_v15  ;;  %v56_v15 = vld [vmem:[%s2146_s0 + $0xf0] sm:$0xff] }
  0x1e   :  { %1581 = vmatprep.subr.msk.bf16.mxu0 %vm1688_vm1, %v1579_v24 }
  0x20   :  { %1618 = vmatpush3.bf16.xpose.msra.mxu1 %v1615_v31 }
  0x21   :  { %1620 = vmatprep.subr.bf16.mxu1 %v1619_v37 }
  0x25   :  { %1584 = vmatpush3.bf16.xpose.msk.msra.mxu0 %vm1688_vm1, %v1579_v24 }
  0x26   :  { %1587 = vmatprep.subr.msk.bf16.mxu0 %vm1688_vm1, %v1585_v30 }
  0x28   :  { %1622 = vmatpush3.bf16.xpose.msra.mxu1 %v1619_v37 }
  0x29   :  { %1624 = vmatprep.subr.bf16.mxu1 %v1623_v43 }
  0x2d   :  { %1590 = vmatpush3.bf16.xpose.msk.msra.mxu0 %vm1688_vm1, %v1585_v30 }
  0x2e   :  { %1593 = vmatprep.subr.msk.bf16.mxu0 %vm1688_vm1, %v1591_v36 }
  0x30   :  { %1626 = vmatpush3.bf16.xpose.msra.mxu1 %v1623_v43 }
  0x31   :  { %1628 = vmatprep.subr.bf16.mxu1 %v1627_v46 }
  0x35   :  { %1596 = vmatpush3.bf16.xpose.msk.msra.mxu0 %vm1688_vm1, %v1591_v36 }
  0x36   :  { %1599 = vmatprep.subr.msk.bf16.mxu0 %vm1688_vm1, %v1597_v42 }
  0x38   :  { %1630 = vmatpush3.bf16.xpose.msra.mxu1 %v1627_v46 }
  0x39   :  { %1632 = vmatprep.subr.bf16.mxu1 %v1631_v51 }
  0x3d   :  { %1602 = vmatpush3.bf16.xpose.msk.msra.mxu0 %vm1688_vm1, %v1597_v42 }
  0x3e   :  { %1505 = vmatprep.subr.mxu0 %v763_v17 }
  0x40   :  { %1634 = vmatpush3.bf16.xpose.msra.mxu1 %v1631_v51 }
  0x41   :  { %1635 = vmatprep.subr.mxu1 %v763_v17 }
  0x44   :  { %1378 = vmatmul.mubr.msk.f32.vlgmr.msra.gmra.mrb[0].mxu0 %vm81_vm0, %v27_v49 }
  0x45   :  { %1380 = vmatprep.mubr.msk.f32.mxu0 %vm81_vm0, %v28_v50  ;;  %1506 = vmatpush3.xpose.msra.mxu0 %v763_v17 }
  0x48   :  { %1381 = vmatmul.mubr.msk.f32.gmra.mrb[2].mxu0 %vm81_vm0, %v29_v52 }
  0x49   :  { %1383 = vmatprep.mubr.msk.f32.mxu0 %vm81_vm0, %v30_v53 }
  0x4c   :  { %1384 = vmatmul.mubr.msk.f32.gmra.mrb[4].mxu0 %vm81_vm0, %v31_v54 }
  0x4d   :  { %1386 = vmatprep.mubr.msk.f32.mxu0 %vm81_vm0, %v32_v55 }
  0x50   :  { %1387 = vmatmul.mubr.msk.f32.gmra.mrb[6].mxu0 %vm81_vm0, %v33_v56 }
  0x51   :  { %1389 = vmatprep.mubr.msk.f32.mxu0 %vm81_vm0, %v34_v57 }
  0x54   :  { %1390 = vmatmul.mubr.msk.f32.gmra.mrb[8].mxu0 %vm81_vm0, %v35_v58 }
  0x55   :  { %1392 = vmatprep.mubr.msk.f32.mxu0 %vm81_vm0, %v36_v59 }
  0x58   :  { %1393 = vmatmul.mubr.msk.f32.gmra.mrb[10].mxu0 %vm81_vm0, %v37_v60 }
  0x59   :  { %1395 = vmatprep.mubr.msk.f32.mxu0 %vm81_vm0, %v38_v61 }
  0x5c   :  { %1396 = vmatmul.mubr.msk.f32.gmra.mrb[12].mxu0 %vm81_vm0, %v39_v62 }
  0x5d   :  { %1398 = vmatprep.mubr.msk.f32.mxu0 %vm81_vm0, %v40_v63 }
  0x60   :  { %1399 = vmatmul.mubr.msk.f32.gmra.mrb[14].mxu0 %vm81_vm0, %v41_v0 }
  0x61   :  { %1401 = vmatprep.mubr.msk.f32.mxu0 %vm81_vm0, %v42_v1 }
  0x64   :  { %1402 = vmatmul.mubr.msk.f32.gmra.mrb[16].mxu0 %vm81_vm0, %v43_v2 }
  0x65   :  { %1404 = vmatprep.mubr.msk.f32.mxu0 %vm81_vm0, %v44_v3 }
  0x68   :  { %1405 = vmatmul.mubr.msk.f32.gmra.mrb[18].mxu0 %vm81_vm0, %v45_v4 }
  0x69   :  { %1407 = vmatprep.mubr.msk.f32.mxu0 %vm81_vm0, %v46_v5 }
  0x6c   :  { %1408 = vmatmul.mubr.msk.f32.gmra.mrb[20].mxu0 %vm81_vm0, %v47_v6 }
  0x6d   :  { %1410 = vmatprep.mubr.msk.f32.mxu0 %vm81_vm0, %v48_v7 }
  0x70   :  { %1411 = vmatmul.mubr.msk.f32.gmra.mrb[22].mxu0 %vm81_vm0, %v49_v8 }
  0x71   :  { %1413 = vmatprep.mubr.msk.f32.mxu0 %vm81_vm0, %v50_v9 }
  0x74   :  { %1414 = vmatmul.mubr.msk.f32.gmra.mrb[24].mxu0 %vm81_vm0, %v51_v10 }
  0x75   :  { %1416 = vmatprep.mubr.msk.f32.mxu0 %vm81_vm0, %v52_v11 }
  0x78   :  { %1417 = vmatmul.mubr.msk.f32.gmra.mrb[26].mxu0 %vm81_vm0, %v53_v12 }
  0x79   :  { %1419 = vmatprep.mubr.msk.f32.mxu0 %vm81_vm0, %v54_v13 }
  0x7c   :  { %1420 = vmatmul.mubr.msk.f32.gmra.mrb[28].mxu0 %vm81_vm0, %v55_v14 }
  0x7d   :  { %1422 = vmatprep.mubr.msk.f32.mxu0 %vm81_vm0, %v56_v15 }
  0x80   :  { %1423 = vmatmul.mubr.msk.f32.gmra.mrb[30].mxu0 %vm81_vm0, %v57_v16 }
 0x117   :  { %v1379_v19 = vpop.f32.mrb[0].mxu0 }
 0x118   :  { %v298_v20 = vadd.f32 %v1379_v19, %v1945_v18  ;;  %v292_v21 = vpop.f32.mrb[1].mxu0 }
 0x119   :  { %v293_v22 = vadd.f32 %v1945_v18, %v292_v21 }
 0x11a   :  { %v452_v25 = vmax.f32 %v298_v20, 0.0 }
 0x11b   :  { %v1382_v23 = vpop.f32.mrb[2].mxu0  ;;  %v451_v24 = vmax.f32 %v293_v22, 0.0 }
 0x11c   :  { %v308_v26 = vadd.f32 %v1382_v23, %v1945_v18  ;;  %v302_v27 = vpop.f32.mrb[3].mxu0 }
 0x11d   :  { %v303_v28 = vadd.f32 %v1945_v18, %v302_v27  ;;  %1457 = vmatprep.mubr.f32.mxu1 %v451_v24 }
 0x11e   :  { %1458 = vmatmul.mubr.f32.vlgmr.msra.gmra.mrb[0].mxu1 %v452_v25  ;;  %v454_v31 = vmax.f32 %v308_v26, 0.0 }
 0x11f   :  { %v453_v29 = vmax.f32 %v303_v28, 0.0  ;;  %v1385_v30 = vpop.f32.mrb[4].mxu0  ;;  %1636 = vmatpush3.xpose.msra.mxu1 %v763_v17 }
 0x120   :  { %v318_v32 = vadd.f32 %v1385_v30, %v1945_v18  ;;  %v312_v33 = vpop.f32.mrb[5].mxu0 }
 0x121   :  { %v313_v34 = vadd.f32 %v1945_v18, %v312_v33  ;;  %1460 = vmatprep.mubr.f32.mxu1 %v453_v29 }
 0x122   :  { %1461 = vmatmul.mubr.f32.gmra.mrb[2].mxu1 %v454_v31  ;;  %v456_v37 = vmax.f32 %v318_v32, 0.0 }
 0x123   :  { %v455_v35 = vmax.f32 %v313_v34, 0.0  ;;  %v1388_v36 = vpop.f32.mrb[6].mxu0 }
 0x124   :  { %v328_v38 = vadd.f32 %v1388_v36, %v1945_v18  ;;  %v322_v39 = vpop.f32.mrb[7].mxu0 }
 0x125   :  { %v323_v40 = vadd.f32 %v1945_v18, %v322_v39  ;;  %1463 = vmatprep.mubr.f32.mxu1 %v455_v35 }
 0x126   :  { %1464 = vmatmul.mubr.f32.gmra.mrb[4].mxu1 %v456_v37  ;;  %v458_v43 = vmax.f32 %v328_v38, 0.0 }
 0x127   :  { %v457_v41 = vmax.f32 %v323_v40, 0.0  ;;  %v1391_v42 = vpop.f32.mrb[8].mxu0 }
 0x128   :  { %v338_v44 = vadd.f32 %v1391_v42, %v1945_v18  ;;  %v332_v45 = vpop.f32.mrb[9].mxu0 }
 0x129   :  { %v333_v46 = vadd.f32 %v1945_v18, %v332_v45  ;;  %1466 = vmatprep.mubr.f32.mxu1 %v457_v41 }
 0x12a   :  { %1467 = vmatmul.mubr.f32.gmra.mrb[6].mxu1 %v458_v43  ;;  %v460_v49 = vmax.f32 %v338_v44, 0.0 }
 0x12b   :  { %v459_v47 = vmax.f32 %v333_v46, 0.0  ;;  %v1394_v48 = vpop.f32.mrb[10].mxu0 }
 0x12c   :  { %v348_v50 = vadd.f32 %v1394_v48, %v1945_v18  ;;  %v342_v51 = vpop.f32.mrb[11].mxu0 }
 0x12d   :  { %v343_v52 = vadd.f32 %v1945_v18, %v342_v51  ;;  %1469 = vmatprep.mubr.f32.mxu1 %v459_v47 }
 0x12e   :  { %1470 = vmatmul.mubr.f32.gmra.mrb[8].mxu1 %v460_v49  ;;  %v462_v55 = vmax.f32 %v348_v50, 0.0 }
 0x12f   :  { %v461_v53 = vmax.f32 %v343_v52, 0.0  ;;  %v1397_v54 = vpop.f32.mrb[12].mxu0  ;;  %v1982_v52 = vld [vmem:[%s2150_s4] ss:$0 sm:$0xff] }
 0x130   :  { %v358_v56 = vadd.f32 %v1397_v54, %v1945_v18  ;;  %v352_v57 = vpop.f32.mrb[13].mxu0 }
 0x131   :  { %v353_v58 = vadd.f32 %v1945_v18, %v352_v57  ;;  %1472 = vmatprep.mubr.f32.mxu1 %v461_v53 }
 0x132   :  { %1473 = vmatmul.mubr.f32.gmra.mrb[10].mxu1 %v462_v55  ;;  %v464_v61 = vmax.f32 %v358_v56, 0.0 }
 0x133   :  { %v463_v59 = vmax.f32 %v353_v58, 0.0  ;;  %v1400_v60 = vpop.f32.mrb[14].mxu0 }
 0x134   :  { %v368_v62 = vadd.f32 %v1400_v60, %v1945_v18  ;;  %v362_v63 = vpop.f32.mrb[15].mxu0 }
 0x135   :  { %v363_v0 = vadd.f32 %v1945_v18, %v362_v63  ;;  %1475 = vmatprep.mubr.f32.mxu1 %v463_v59 }
 0x136   :  { %1476 = vmatmul.mubr.f32.gmra.mrb[12].mxu1 %v464_v61  ;;  %v466_v3 = vmax.f32 %v368_v62, 0.0 }
 0x137   :  { %v465_v1 = vmax.f32 %v363_v0, 0.0  ;;  %v1403_v2 = vpop.f32.mrb[16].mxu0 }
 0x138   :  { %v378_v4 = vadd.f32 %v1403_v2, %v1945_v18  ;;  %v372_v5 = vpop.f32.mrb[17].mxu0 }
 0x139   :  { %v373_v6 = vadd.f32 %v1945_v18, %v372_v5  ;;  %1478 = vmatprep.mubr.f32.mxu1 %v465_v1 }
 0x13a   :  { %1479 = vmatmul.mubr.f32.gmra.mrb[14].mxu1 %v466_v3  ;;  %v468_v9 = vmax.f32 %v378_v4, 0.0 }
 0x13b   :  { %v467_v7 = vmax.f32 %v373_v6, 0.0  ;;  %v1406_v8 = vpop.f32.mrb[18].mxu0 }
 0x13c   :  { %v388_v10 = vadd.f32 %v1406_v8, %v1945_v18  ;;  %v382_v11 = vpop.f32.mrb[19].mxu0 }
 0x13d   :  { %v383_v12 = vadd.f32 %v1945_v18, %v382_v11  ;;  %1481 = vmatprep.mubr.f32.mxu1 %v467_v7 }
 0x13e   :  { %1482 = vmatmul.mubr.f32.gmra.mrb[16].mxu1 %v468_v9  ;;  %v470_v15 = vmax.f32 %v388_v10, 0.0 }
 0x13f   :  { %v469_v13 = vmax.f32 %v383_v12, 0.0  ;;  %v1409_v14 = vpop.f32.mrb[20].mxu0 }
 0x140   :  { %v398_v16 = vadd.f32 %v1409_v14, %v1945_v18  ;;  %v392_v17 = vpop.f32.mrb[21].mxu0 }
 0x141   :  { %v393_v19 = vadd.f32 %v1945_v18, %v392_v17  ;;  %1484 = vmatprep.mubr.f32.mxu1 %v469_v13 }
 0x142   :  { %1485 = vmatmul.mubr.f32.gmra.mrb[18].mxu1 %v470_v15  ;;  %v472_v22 = vmax.f32 %v398_v16, 0.0 }
 0x143   :  { %v471_v20 = vmax.f32 %v393_v19, 0.0  ;;  %v1412_v21 = vpop.f32.mrb[22].mxu0 }
 0x144   :  { %v408_v23 = vadd.f32 %v1412_v21, %v1945_v18  ;;  %v402_v24 = vpop.f32.mrb[23].mxu0 }
 0x145   :  { %v403_v25 = vadd.f32 %v1945_v18, %v402_v24  ;;  %1487 = vmatprep.mubr.f32.mxu1 %v471_v20 }
 0x146   :  { %1488 = vmatmul.mubr.f32.gmra.mrb[20].mxu1 %v472_v22  ;;  %v474_v28 = vmax.f32 %v408_v23, 0.0 }
 0x147   :  { %v473_v26 = vmax.f32 %v403_v25, 0.0  ;;  %v1415_v27 = vpop.f32.mrb[24].mxu0 }
 0x148   :  { %v418_v29 = vadd.f32 %v1415_v27, %v1945_v18  ;;  %v412_v30 = vpop.f32.mrb[25].mxu0 }
 0x149   :  { %v413_v31 = vadd.f32 %v1945_v18, %v412_v30  ;;  %1490 = vmatprep.mubr.f32.mxu1 %v473_v26 }
 0x14a   :  { %1491 = vmatmul.mubr.f32.gmra.mrb[22].mxu1 %v474_v28  ;;  %v476_v34 = vmax.f32 %v418_v29, 0.0 }
 0x14b   :  { %v475_v32 = vmax.f32 %v413_v31, 0.0  ;;  %v1418_v33 = vpop.f32.mrb[26].mxu0 }
 0x14c   :  { %v428_v35 = vadd.f32 %v1418_v33, %v1945_v18  ;;  %v422_v36 = vpop.f32.mrb[27].mxu0 }
 0x14d   :  { %v423_v37 = vadd.f32 %v1945_v18, %v422_v36  ;;  %1493 = vmatprep.mubr.f32.mxu1 %v475_v32 }
 0x14e   :  { %1494 = vmatmul.mubr.f32.gmra.mrb[24].mxu1 %v476_v34  ;;  %v478_v40 = vmax.f32 %v428_v35, 0.0 }
 0x14f   :  { %v477_v38 = vmax.f32 %v423_v37, 0.0  ;;  %v1421_v39 = vpop.f32.mrb[28].mxu0 }
 0x150   :  { %v438_v41 = vadd.f32 %v1421_v39, %v1945_v18  ;;  %v432_v42 = vpop.f32.mrb[29].mxu0 }
 0x151   :  { %v433_v43 = vadd.f32 %v1945_v18, %v432_v42  ;;  %1496 = vmatprep.mubr.f32.mxu1 %v477_v38 }
 0x152   :  { %1497 = vmatmul.mubr.f32.gmra.mrb[26].mxu1 %v478_v40  ;;  %v480_v46 = vmax.f32 %v438_v41, 0.0 }
 0x153   :  { %v479_v44 = vmax.f32 %v433_v43, 0.0  ;;  %v1424_v45 = vpop.f32.mrb[30].mxu0 }
 0x154   :  { %v448_v47 = vadd.f32 %v1424_v45, %v1945_v18  ;;  %v442_v48 = vpop.f32.mrb[31].mxu0 }
 0x155   :  { %v443_v49 = vadd.f32 %v1945_v18, %v442_v48  ;;  %1499 = vmatprep.mubr.f32.mxu1 %v479_v44 }
 0x156   :  { %1500 = vmatmul.mubr.f32.gmra.mrb[28].mxu1 %v480_v46  ;;  %v482_v51 = vmax.f32 %v448_v47, 0.0 }
 0x157   :  { %v481_v50 = vmax.f32 %v443_v49, 0.0 }
 0x159   :  { %1502 = vmatprep.mubr.f32.mxu1 %v481_v50 }
 0x15a   :  { %1503 = vmatmul.mubr.f32.gmra.mrb[30].mxu1 %v482_v51 }
 0x1f1   :  { %v1459_v53 = vpop.f32.mrb[0].mxu1 }
 0x1f2   :  { %v578_v54 = vadd.f32 %v1459_v53, %v1982_v52  ;;  %v572_v55 = vpop.f32.mrb[1].mxu1 }
 0x1f3   :  { %v573_v56 = vadd.f32 %v1982_v52, %v572_v55 }
 0x1f4   :  { %v732_v18 = vmax.f32 %v578_v54, 0.0 }
 0x1f5   :  { %v731_v57 = vmax.f32 %v573_v56, 0.0  ;;  %v1462_v58 = vpop.f32.mrb[2].mxu1 }
 0x1f6   :  { %v588_v59 = vadd.f32 %v1462_v58, %v1982_v52  ;;  %v582_v60 = vpop.f32.mrb[3].mxu1 }
 0x1f7   :  { %v583_v61 = vadd.f32 %v1982_v52, %v582_v60  ;;  %1507 = vmatprep.mubr.f32.mxu0 %v731_v57 }
 0x1f8   :  { %1508 = vmatmul.mubr.f32.vlgmr.msra.gmra.mrb[32].mxu0 %v732_v18  ;;  %v734_v0 = vmax.f32 %v588_v59, 0.0 }
 0x1f9   :  { %v733_v62 = vmax.f32 %v583_v61, 0.0  ;;  %v1465_v63 = vpop.f32.mrb[4].mxu1 }
 0x1fa   :  { %v598_v1 = vadd.f32 %v1465_v63, %v1982_v52  ;;  %v592_v2 = vpop.f32.mrb[5].mxu1 }
 0x1fb   :  { %v593_v3 = vadd.f32 %v1982_v52, %v592_v2  ;;  %1510 = vmatprep.mubr.f32.mxu0 %v733_v62 }
 0x1fc   :  { %1511 = vmatmul.mubr.f32.gmra.mrb[34].mxu0 %v734_v0  ;;  %v736_v6 = vmax.f32 %v598_v1, 0.0 }
 0x1fd   :  { %v735_v4 = vmax.f32 %v593_v3, 0.0  ;;  %v1468_v5 = vpop.f32.mrb[6].mxu1 }
 0x1fe   :  { %v608_v7 = vadd.f32 %v1468_v5, %v1982_v52  ;;  %v602_v8 = vpop.f32.mrb[7].mxu1 }
 0x1ff   :  { %v603_v9 = vadd.f32 %v1982_v52, %v602_v8  ;;  %1513 = vmatprep.mubr.f32.mxu0 %v735_v4 }
 0x200   :  { %1514 = vmatmul.mubr.f32.gmra.mrb[36].mxu0 %v736_v6  ;;  %v738_v12 = vmax.f32 %v608_v7, 0.0 }
 0x201   :  { %v737_v10 = vmax.f32 %v603_v9, 0.0  ;;  %v1471_v11 = vpop.f32.mrb[8].mxu1 }
 0x202   :  { %v618_v13 = vadd.f32 %v1471_v11, %v1982_v52  ;;  %v612_v14 = vpop.f32.mrb[9].mxu1 }
 0x203   :  { %v613_v15 = vadd.f32 %v1982_v52, %v612_v14  ;;  %1516 = vmatprep.mubr.f32.mxu0 %v737_v10 }
 0x204   :  { %1517 = vmatmul.mubr.f32.gmra.mrb[38].mxu0 %v738_v12  ;;  %v740_v19 = vmax.f32 %v618_v13, 0.0 }
 0x205   :  { %v739_v16 = vmax.f32 %v613_v15, 0.0  ;;  %v1474_v17 = vpop.f32.mrb[10].mxu1 }
 0x206   :  { %v628_v20 = vadd.f32 %v1474_v17, %v1982_v52  ;;  %v622_v21 = vpop.f32.mrb[11].mxu1 }
 0x207   :  { %v623_v22 = vadd.f32 %v1982_v52, %v622_v21  ;;  %1519 = vmatprep.mubr.f32.mxu0 %v739_v16 }
 0x208   :  { %1520 = vmatmul.mubr.f32.gmra.mrb[40].mxu0 %v740_v19  ;;  %v742_v25 = vmax.f32 %v628_v20, 0.0 }
 0x209   :  { %v741_v23 = vmax.f32 %v623_v22, 0.0  ;;  %v1477_v24 = vpop.f32.mrb[12].mxu1  ;;  %v2019_v22 = vld [vmem:[%s2152_s6] ss:$0 sm:$0xff] }
 0x20a   :  { %v638_v26 = vadd.f32 %v1477_v24, %v1982_v52  ;;  %v632_v27 = vpop.f32.mrb[13].mxu1 }
 0x20b   :  { %v633_v28 = vadd.f32 %v1982_v52, %v632_v27  ;;  %1522 = vmatprep.mubr.f32.mxu0 %v741_v23 }
 0x20c   :  { %1523 = vmatmul.mubr.f32.gmra.mrb[42].mxu0 %v742_v25  ;;  %v744_v31 = vmax.f32 %v638_v26, 0.0 }
 0x20d   :  { %v743_v29 = vmax.f32 %v633_v28, 0.0  ;;  %v1480_v30 = vpop.f32.mrb[14].mxu1 }
 0x20e   :  { %v648_v32 = vadd.f32 %v1480_v30, %v1982_v52  ;;  %v642_v33 = vpop.f32.mrb[15].mxu1 }
 0x20f   :  { %v643_v34 = vadd.f32 %v1982_v52, %v642_v33  ;;  %1525 = vmatprep.mubr.f32.mxu0 %v743_v29 }
 0x210   :  { %1526 = vmatmul.mubr.f32.gmra.mrb[44].mxu0 %v744_v31  ;;  %v746_v37 = vmax.f32 %v648_v32, 0.0 }
 0x211   :  { %v745_v35 = vmax.f32 %v643_v34, 0.0  ;;  %v1483_v36 = vpop.f32.mrb[16].mxu1 }
 0x212   :  { %v658_v38 = vadd.f32 %v1483_v36, %v1982_v52  ;;  %v652_v39 = vpop.f32.mrb[17].mxu1 }
 0x213   :  { %v653_v40 = vadd.f32 %v1982_v52, %v652_v39  ;;  %1528 = vmatprep.mubr.f32.mxu0 %v745_v35 }
 0x214   :  { %1529 = vmatmul.mubr.f32.gmra.mrb[46].mxu0 %v746_v37  ;;  %v748_v43 = vmax.f32 %v658_v38, 0.0 }
 0x215   :  { %v747_v41 = vmax.f32 %v653_v40, 0.0  ;;  %v1486_v42 = vpop.f32.mrb[18].mxu1 }
 0x216   :  { %v668_v44 = vadd.f32 %v1486_v42, %v1982_v52  ;;  %v662_v45 = vpop.f32.mrb[19].mxu1 }
 0x217   :  { %v663_v46 = vadd.f32 %v1982_v52, %v662_v45  ;;  %1531 = vmatprep.mubr.f32.mxu1 %v747_v41 }
 0x218   :  { %1532 = vmatmul.mubr.f32.vlgmr.msra.gmra.mrb[32].mxu1 %v748_v43  ;;  %v750_v49 = vmax.f32 %v668_v44, 0.0 }
 0x219   :  { %v749_v47 = vmax.f32 %v663_v46, 0.0  ;;  %v1489_v48 = vpop.f32.mrb[20].mxu1 }
 0x21a   :  { %v678_v50 = vadd.f32 %v1489_v48, %v1982_v52  ;;  %v672_v51 = vpop.f32.mrb[21].mxu1 }
 0x21b   :  { %v673_v53 = vadd.f32 %v1982_v52, %v672_v51  ;;  %1534 = vmatprep.mubr.f32.mxu1 %v749_v47 }
 0x21c   :  { %1535 = vmatmul.mubr.f32.gmra.mrb[34].mxu1 %v750_v49  ;;  %v752_v56 = vmax.f32 %v678_v50, 0.0 }
 0x21d   :  { %v751_v54 = vmax.f32 %v673_v53, 0.0  ;;  %v1492_v55 = vpop.f32.mrb[22].mxu1 }
 0x21e   :  { %v688_v57 = vadd.f32 %v1492_v55, %v1982_v52  ;;  %v682_v58 = vpop.f32.mrb[23].mxu1 }
 0x21f   :  { %v683_v18 = vadd.f32 %v1982_v52, %v682_v58  ;;  %1537 = vmatprep.mubr.f32.mxu1 %v751_v54 }
 0x220   :  { %1538 = vmatmul.mubr.f32.gmra.mrb[36].mxu1 %v752_v56  ;;  %v754_v61 = vmax.f32 %v688_v57, 0.0 }
 0x221   :  { %v753_v59 = vmax.f32 %v683_v18, 0.0  ;;  %v1495_v60 = vpop.f32.mrb[24].mxu1 }
 0x222   :  { %v698_v62 = vadd.f32 %v1495_v60, %v1982_v52  ;;  %v692_v63 = vpop.f32.mrb[25].mxu1 }
 0x223   :  { %v693_v0 = vadd.f32 %v1982_v52, %v692_v63  ;;  %1540 = vmatprep.mubr.f32.mxu1 %v753_v59 }
 0x224   :  { %1541 = vmatmul.mubr.f32.gmra.mrb[38].mxu1 %v754_v61  ;;  %v756_v3 = vmax.f32 %v698_v62, 0.0 }
 0x225   :  { %v755_v1 = vmax.f32 %v693_v0, 0.0  ;;  %v1498_v2 = vpop.f32.mrb[26].mxu1 }
 0x226   :  { %v708_v4 = vadd.f32 %v1498_v2, %v1982_v52  ;;  %v702_v5 = vpop.f32.mrb[27].mxu1 }
 0x227   :  { %v703_v6 = vadd.f32 %v1982_v52, %v702_v5  ;;  %1543 = vmatprep.mubr.f32.mxu1 %v755_v1 }
 0x228   :  { %1544 = vmatmul.mubr.f32.gmra.mrb[40].mxu1 %v756_v3  ;;  %v758_v9 = vmax.f32 %v708_v4, 0.0 }
 0x229   :  { %v757_v7 = vmax.f32 %v703_v6, 0.0  ;;  %v1501_v8 = vpop.f32.mrb[28].mxu1 }
 0x22a   :  { %v718_v10 = vadd.f32 %v1501_v8, %v1982_v52  ;;  %v712_v11 = vpop.f32.mrb[29].mxu1 }
 0x22b   :  { %v713_v12 = vadd.f32 %v1982_v52, %v712_v11  ;;  %1546 = vmatprep.mubr.f32.mxu1 %v757_v7 }
 0x22c   :  { %1547 = vmatmul.mubr.f32.gmra.mrb[42].mxu1 %v758_v9  ;;  %v760_v15 = vmax.f32 %v718_v10, 0.0 }
 0x22d   :  { %v759_v13 = vmax.f32 %v713_v12, 0.0  ;;  %v1504_v14 = vpop.f32.mrb[30].mxu1 }
 0x22e   :  { %v728_v16 = vadd.f32 %v1504_v14, %v1982_v52  ;;  %v722_v17 = vpop.f32.mrb[31].mxu1 }
 0x22f   :  { %v723_v19 = vadd.f32 %v1982_v52, %v722_v17  ;;  %1549 = vmatprep.mubr.f32.mxu1 %v759_v13 }
 0x230   :  { %1550 = vmatmul.mubr.f32.gmra.mrb[44].mxu1 %v760_v15  ;;  %v762_v21 = vmax.f32 %v728_v16, 0.0 }
 0x231   :  { %v761_v20 = vmax.f32 %v723_v19, 0.0 }
 0x233   :  { %1552 = vmatprep.mubr.f32.mxu1 %v761_v20 }
 0x234   :  { %1553 = vmatmul.mubr.f32.gmra.mrb[46].mxu1 %v762_v21 }
 0x2cb   :  { %v1509_v23 = vpop.f32.mrb[32].mxu0 }
 0x2cc   :  { %v843_v24 = vadd.f32 %v1509_v23, %v2019_v22  ;;  %v837_v25 = vpop.f32.mrb[33].mxu0 }
 0x2cd   :  { %v838_v26 = vadd.f32 %v2019_v22, %v837_v25 }
 0x2ce   :  { %998 = vst.msk [vmem:[#allocation2 + $0x8] sm:$0xff] %vm996_vm2, %v843_v24 }
 0x2cf   :  { %997 = vst.msk [vmem:[#allocation2] sm:$0xff] %vm996_vm2, %v838_v26  ;;  %v1512_v52 = vpop.f32.mrb[34].mxu0 }
 0x2d0   :  { %v853_v27 = vadd.f32 %v1512_v52, %v2019_v22  ;;  %v847_v28 = vpop.f32.mrb[35].mxu0 }
 0x2d1   :  { %v848_v29 = vadd.f32 %v2019_v22, %v847_v28 }
 0x2d2   :  { %1000 = vst.msk [vmem:[#allocation2 + $0x18] sm:$0xff] %vm996_vm2, %v853_v27 }
 0x2d3   :  { %999 = vst.msk [vmem:[#allocation2 + $0x10] sm:$0xff] %vm996_vm2, %v848_v29  ;;  %v1515_v30 = vpop.f32.mrb[36].mxu0 }
 0x2d4   :  { %v863_v31 = vadd.f32 %v1515_v30, %v2019_v22  ;;  %v857_v32 = vpop.f32.mrb[37].mxu0 }
 0x2d5   :  { %v1108_v33 = vld [vmem:[#allocation2 + $0x8] sm:$0xff]  ;;  %v858_v34 = vadd.f32 %v2019_v22, %v857_v32 }
 0x2d6   :  { %1109 = vst [vmem:[%s2153_s7 + $0x8] sm:$0xff] %v1108_v33  ;;  %v1106_v35 = vld [vmem:[#allocation2] sm:$0xff]  ;;  %1002 = vst.msk [vmem:[#allocation2 + $0x28] sm:$0xff] %vm996_vm2, %v863_v31 }
 0x2d7   :  { %1107 = vst [vmem:[%s2153_s7] sm:$0xff] %v1106_v35  ;;  %1001 = vst.msk [vmem:[#allocation2 + $0x20] sm:$0xff] %vm996_vm2, %v858_v34  ;;  %v1518_v36 = vpop.f32.mrb[38].mxu0 }
 0x2d8   :  { %v873_v37 = vadd.f32 %v1518_v36, %v2019_v22  ;;  %v867_v38 = vpop.f32.mrb[39].mxu0 }
 0x2d9   :  { %v1112_v39 = vld [vmem:[#allocation2 + $0x18] sm:$0xff]  ;;  %v868_v40 = vadd.f32 %v2019_v22, %v867_v38 }
 0x2da   :  { %1113 = vst [vmem:[%s2153_s7 + $0x18] sm:$0xff] %v1112_v39  ;;  %v1110_v41 = vld [vmem:[#allocation2 + $0x10] sm:$0xff]  ;;  %1004 = vst.msk [vmem:[#allocation2 + $0x38] sm:$0xff] %vm996_vm2, %v873_v37 }
 0x2db   :  { %1111 = vst [vmem:[%s2153_s7 + $0x10] sm:$0xff] %v1110_v41  ;;  %1003 = vst.msk [vmem:[#allocation2 + $0x30] sm:$0xff] %vm996_vm2, %v868_v40  ;;  %v1521_v42 = vpop.f32.mrb[40].mxu0 }
 0x2dc   :  { %v883_v43 = vadd.f32 %v1521_v42, %v2019_v22  ;;  %v877_v44 = vpop.f32.mrb[41].mxu0 }
 0x2dd   :  { %v1116_v45 = vld [vmem:[#allocation2 + $0x28] sm:$0xff]  ;;  %v878_v46 = vadd.f32 %v2019_v22, %v877_v44 }
 0x2de   :  { %1117 = vst [vmem:[%s2153_s7 + $0x28] sm:$0xff] %v1116_v45  ;;  %v1114_v47 = vld [vmem:[#allocation2 + $0x20] sm:$0xff]  ;;  %1006 = vst.msk [vmem:[#allocation2 + $0x48] sm:$0xff] %vm996_vm2, %v883_v43 }
 0x2df   :  { %1115 = vst [vmem:[%s2153_s7 + $0x20] sm:$0xff] %v1114_v47  ;;  %1005 = vst.msk [vmem:[#allocation2 + $0x40] sm:$0xff] %vm996_vm2, %v878_v46  ;;  %v1524_v48 = vpop.f32.mrb[42].mxu0 }
 0x2e0   :  { %v893_v49 = vadd.f32 %v1524_v48, %v2019_v22  ;;  %v887_v50 = vpop.f32.mrb[43].mxu0 }
 0x2e1   :  { %v1120_v51 = vld [vmem:[#allocation2 + $0x38] sm:$0xff]  ;;  %v888_v53 = vadd.f32 %v2019_v22, %v887_v50 }
 0x2e2   :  { %1121 = vst [vmem:[%s2153_s7 + $0x38] sm:$0xff] %v1120_v51  ;;  %v1118_v54 = vld [vmem:[#allocation2 + $0x30] sm:$0xff]  ;;  %1008 = vst.msk [vmem:[#allocation2 + $0x58] sm:$0xff] %vm996_vm2, %v893_v49 }
 0x2e3   :  { %1119 = vst [vmem:[%s2153_s7 + $0x30] sm:$0xff] %v1118_v54  ;;  %1007 = vst.msk [vmem:[#allocation2 + $0x50] sm:$0xff] %vm996_vm2, %v888_v53  ;;  %v1527_v55 = vpop.f32.mrb[44].mxu0 }
 0x2e4   :  { %v903_v56 = vadd.f32 %v1527_v55, %v2019_v22  ;;  %v897_v57 = vpop.f32.mrb[45].mxu0 }
 0x2e5   :  { %v1124_v58 = vld [vmem:[#allocation2 + $0x48] sm:$0xff]  ;;  %v898_v18 = vadd.f32 %v2019_v22, %v897_v57 }
 0x2e6   :  { %1125 = vst [vmem:[%s2153_s7 + $0x48] sm:$0xff] %v1124_v58  ;;  %v1122_v59 = vld [vmem:[#allocation2 + $0x40] sm:$0xff]  ;;  %1010 = vst.msk [vmem:[#allocation2 + $0x68] sm:$0xff] %vm996_vm2, %v903_v56 }
 0x2e7   :  { %1123 = vst [vmem:[%s2153_s7 + $0x40] sm:$0xff] %v1122_v59  ;;  %1009 = vst.msk [vmem:[#allocation2 + $0x60] sm:$0xff] %vm996_vm2, %v898_v18  ;;  %v1530_v60 = vpop.f32.mrb[46].mxu0 }
 0x2e8   :  { %v913_v61 = vadd.f32 %v1530_v60, %v2019_v22  ;;  %v907_v62 = vpop.f32.mrb[47].mxu0 }
 0x2e9   :  { %v1128_v63 = vld [vmem:[#allocation2 + $0x58] sm:$0xff]  ;;  %v908_v0 = vadd.f32 %v2019_v22, %v907_v62 }
 0x2ea   :  { %1129 = vst [vmem:[%s2153_s7 + $0x58] sm:$0xff] %v1128_v63  ;;  %v1126_v1 = vld [vmem:[#allocation2 + $0x50] sm:$0xff]  ;;  %1012 = vst.msk [vmem:[#allocation2 + $0x78] sm:$0xff] %vm996_vm2, %v913_v61 }
 0x2eb   :  { %1127 = vst [vmem:[%s2153_s7 + $0x50] sm:$0xff] %v1126_v1  ;;  %1011 = vst.msk [vmem:[#allocation2 + $0x70] sm:$0xff] %vm996_vm2, %v908_v0  ;;  %v1533_v2 = vpop.f32.mrb[32].mxu1 }
 0x2ec   :  { %v923_v3 = vadd.f32 %v1533_v2, %v2019_v22  ;;  %v917_v4 = vpop.f32.mrb[33].mxu1 }
 0x2ed   :  { %v1132_v5 = vld [vmem:[#allocation2 + $0x68] sm:$0xff]  ;;  %v918_v6 = vadd.f32 %v2019_v22, %v917_v4 }
 0x2ee   :  { %1133 = vst [vmem:[%s2153_s7 + $0x68] sm:$0xff] %v1132_v5  ;;  %v1130_v7 = vld [vmem:[#allocation2 + $0x60] sm:$0xff]  ;;  %1014 = vst.msk [vmem:[#allocation2 + $0x88] sm:$0xff] %vm996_vm2, %v923_v3 }
 0x2ef   :  { %1131 = vst [vmem:[%s2153_s7 + $0x60] sm:$0xff] %v1130_v7  ;;  %1013 = vst.msk [vmem:[#allocation2 + $0x80] sm:$0xff] %vm996_vm2, %v918_v6  ;;  %v1536_v8 = vpop.f32.mrb[34].mxu1 }
 0x2f0   :  { %v933_v9 = vadd.f32 %v1536_v8, %v2019_v22  ;;  %v927_v10 = vpop.f32.mrb[35].mxu1 }
 0x2f1   :  { %v1136_v11 = vld [vmem:[#allocation2 + $0x78] sm:$0xff]  ;;  %v928_v12 = vadd.f32 %v2019_v22, %v927_v10 }
 0x2f2   :  { %1137 = vst [vmem:[%s2153_s7 + $0x78] sm:$0xff] %v1136_v11  ;;  %v1134_v13 = vld [vmem:[#allocation2 + $0x70] sm:$0xff]  ;;  %1016 = vst.msk [vmem:[#allocation2 + $0x98] sm:$0xff] %vm996_vm2, %v933_v9 }
 0x2f3   :  { %1135 = vst [vmem:[%s2153_s7 + $0x70] sm:$0xff] %v1134_v13  ;;  %1015 = vst.msk [vmem:[#allocation2 + $0x90] sm:$0xff] %vm996_vm2, %v928_v12  ;;  %v1539_v14 = vpop.f32.mrb[36].mxu1 }
 0x2f4   :  { %v943_v15 = vadd.f32 %v1539_v14, %v2019_v22  ;;  %v937_v16 = vpop.f32.mrb[37].mxu1 }
 0x2f5   :  { %v1140_v17 = vld [vmem:[#allocation2 + $0x88] sm:$0xff]  ;;  %v938_v19 = vadd.f32 %v2019_v22, %v937_v16 }
 0x2f6   :  { %1141 = vst [vmem:[%s2153_s7 + $0x88] sm:$0xff] %v1140_v17  ;;  %v1138_v20 = vld [vmem:[#allocation2 + $0x80] sm:$0xff]  ;;  %1018 = vst.msk [vmem:[#allocation2 + $0xa8] sm:$0xff] %vm996_vm2, %v943_v15 }
 0x2f7   :  { %1139 = vst [vmem:[%s2153_s7 + $0x80] sm:$0xff] %v1138_v20  ;;  %1017 = vst.msk [vmem:[#allocation2 + $0xa0] sm:$0xff] %vm996_vm2, %v938_v19  ;;  %v1542_v21 = vpop.f32.mrb[38].mxu1 }
 0x2f8   :  { %v953_v23 = vadd.f32 %v1542_v21, %v2019_v22  ;;  %v947_v24 = vpop.f32.mrb[39].mxu1 }
 0x2f9   :  { %v1144_v25 = vld [vmem:[#allocation2 + $0x98] sm:$0xff]  ;;  %v948_v26 = vadd.f32 %v2019_v22, %v947_v24 }
 0x2fa   :  { %1145 = vst [vmem:[%s2153_s7 + $0x98] sm:$0xff] %v1144_v25  ;;  %v1142_v52 = vld [vmem:[#allocation2 + $0x90] sm:$0xff]  ;;  %1020 = vst.msk [vmem:[#allocation2 + $0xb8] sm:$0xff] %vm996_vm2, %v953_v23 }
 0x2fb   :  { %1143 = vst [vmem:[%s2153_s7 + $0x90] sm:$0xff] %v1142_v52  ;;  %1019 = vst.msk [vmem:[#allocation2 + $0xb0] sm:$0xff] %vm996_vm2, %v948_v26  ;;  %v1545_v27 = vpop.f32.mrb[40].mxu1 }
 0x2fc   :  { %v957_v28 = vpop.f32.mrb[41].mxu1 }
 0x2fd   :  { %v1148_v29 = vld [vmem:[#allocation2 + $0xa8] sm:$0xff]  ;;  %v958_v30 = vadd.f32 %v2019_v22, %v957_v28 }
 0x2fe   :  { %1149 = vst [vmem:[%s2153_s7 + $0xa8] sm:$0xff] %v1148_v29  ;;  %v1146_v31 = vld [vmem:[#allocation2 + $0xa0] sm:$0xff] }
 0x2ff   :  { %1147 = vst [vmem:[%s2153_s7 + $0xa0] sm:$0xff] %v1146_v31  ;;  %1021 = vst.msk [vmem:[#allocation2 + $0xc0] sm:$0xff] %vm996_vm2, %v958_v30  ;;  %v1548_v32 = vpop.f32.mrb[42].mxu1 }
 0x300   :  { %v967_v33 = vpop.f32.mrb[43].mxu1 }
 0x301   :  { %v1152_v34 = vld [vmem:[#allocation2 + $0xb8] sm:$0xff] }
 0x302   :  { %1153 = vst [vmem:[%s2153_s7 + $0xb8] sm:$0xff] %v1152_v34  ;;  %v1150_v35 = vld [vmem:[#allocation2 + $0xb0] sm:$0xff] }
 0x303   :  { %1151 = vst [vmem:[%s2153_s7 + $0xb0] sm:$0xff] %v1150_v35  ;;  %v1551_v22 = vpop.f32.mrb[44].mxu1 }
 0x304   :  { %v977_v36 = vpop.f32.mrb[45].mxu1 }
 0x306   :  { %v1154_v37 = vld [vmem:[#allocation2 + $0xc0] sm:$0xff] }
 0x307   :  { %1155 = vst [vmem:[%s2153_s7 + $0xc0] sm:$0xff] %v1154_v37  ;;  %v1554_v38 = vpop.f32.mrb[46].mxu1 }
 0x308   :  { %v987_v39 = vpop.f32.mrb[47].mxu1 }

</bundles_post_ra>
